<compile_context>
chip_gen: v7x
topology: tpu7x:2x2x1
jax: 0.10.0
libtpu: 0.0.40
codegen_flags: <defaults>
</compile_context>

<pallas_src>
import math

import jax
import jax.numpy as jnp
from jax.experimental import pallas as pl
from jax.experimental.pallas import tpu as pltpu


def _round_up(n: int, m: int) -> int:
    return ((n + m - 1) // m) * m


def _stable_sigmoid(x):
    # Numerically stable sigmoid, exact divide (tiny widths -> negligible cost).
    z = jnp.exp(-jnp.abs(x))
    s = z / (1.0 + z)                      # sigmoid(-|x|)
    return jnp.where(x >= 0.0, 1.0 - s, s)


def _make_kernel(H: int):
    def _trust_kernel(x_ref,
                      wcat_ref, bcat_ref, w2_ref, b2_ref, w3_ref, b3_ref,
                      dpw_ref, out_ref):
        """One batch tile. Packed output cols: 0 trust, 1 chain, 2 dp, 3 fraud, 4:8 ethics."""
        x = x_ref[...]                                 # (TB, D) f32 — elementwise path
        xb = x.astype(wcat_ref.dtype)                  # bf16 MXU operand

        # ---- one fused GEMM for trust_layer L1 and folded fusion+ethics ------
        y = jnp.dot(xb, wcat_ref[...],
                    preferred_element_type=jnp.float32) + bcat_ref[...]
        h1 = jnp.maximum(y[:, :H], 0.0)                # (TB, H)
        ethics = _stable_sigmoid(y[:, H:H + 4])        # (TB, 4)

        # ---- trust_layer L2 ----------------------------------------------------
        h2 = jnp.maximum(
            jnp.dot(h1.astype(w2_ref.dtype), w2_ref[...],
                    preferred_element_type=jnp.float32) + b2_ref[...],
            0.0)                                       # (TB, H//2)

        # ---- width-1 heads as MXU matvecs (keep XLU free; MXU is near idle) ---
        logit = jnp.dot(h2, w3_ref[...],
                        preferred_element_type=jnp.float32) + b3_ref[...]
        chain = _stable_sigmoid(logit)                 # (TB, 1)
        dp = jnp.dot(jnp.abs(x), dpw_ref[...],
                     preferred_element_type=jnp.float32)          # (TB, 1) == mean(|x|)

        # ---- only remaining cross-lane reduce: fraud max (XLU) ----------------
        fraud = jnp.max(x, axis=-1, keepdims=True)     # (TB, 1)

        # ---- trust value (exact divide; pole behaviour matches the reference) -
        trust = (0.6 * chain + 0.3 * dp) / (0.1 * fraud + 1.0)

        # ---- single packed store: one (TB, 8) block -> one writeback ----------
        out_ref[...] = jnp.concatenate([trust, chain, dp, fraud, ethics], axis=-1)

    return _trust_kernel


def _xavier_uniform(key, fan_in, fan_out):
    # PyTorch xavier_uniform_ on a Linear weight (out, in); stored transposed
    # as (in, out) so the kernel computes x @ W.
    limit = math.sqrt(6.0 / (fan_in + fan_out))
    return jax.random.uniform(key, (fan_in, fan_out), jnp.float32, -limit, limit)


def make_params(key, input_dim, hidden_dim):
    h2 = hidden_dim // 2
    keys = jax.random.split(key, 8)
    return dict(
        w1=_xavier_uniform(keys[0], input_dim, hidden_dim),
        b1=jnp.zeros((1, hidden_dim), jnp.float32),
        w2=_xavier_uniform(keys[1], hidden_dim, h2),
        b2=jnp.zeros((1, h2), jnp.float32),
        w3=_xavier_uniform(keys[2], h2, 1),
        b3=jnp.zeros((1, 1), jnp.float32),
        # MHA value / output projections (q/k projections mathematically cancel
        # for seq_len == 1, see header).
        wv=_xavier_uniform(keys[3], hidden_dim, hidden_dim),
        bv=jnp.zeros((1, hidden_dim), jnp.float32),
        wo=_xavier_uniform(keys[4], hidden_dim, hidden_dim),
        bo=jnp.zeros((1, hidden_dim), jnp.float32),
        we=_xavier_uniform(keys[5], hidden_dim, 4),
        be=jnp.zeros((1, 4), jnp.float32),
    )


def ahin_trust_forward(features, params, *, tile_b=4096, matmul_dtype=jnp.bfloat16):
    B, D = features.shape
    H = params["w1"].shape[1]

    # ---- fold fusion_layer + ethics_layer once, in f32, host-side (plain XLA).
    # seq_len == 1 => attention output is out_proj(v_proj(x)); `fused` is never
    # returned, so wv @ wo @ we collapses to a single (H, 4) weight.
    w_oe = params["wo"] @ params["we"]                                      # (H, 4)
    wxe = params["wv"] @ w_oe                                               # (H, 4)
    bxe = params["bv"] @ w_oe + params["bo"] @ params["we"] + params["be"]  # (1, 4)

    # ---- fuse all x-LHS GEMM weights into one matrix; MXU operands in bf16 ---
    wcat = jnp.concatenate([params["w1"], wxe], axis=1).astype(matmul_dtype)  # (D, H+4)
    bcat = jnp.concatenate([params["b1"], bxe], axis=1)                       # (1, H+4) f32
    w2 = params["w2"].astype(matmul_dtype)
    b2, w3, b3 = params["b2"], params["w3"], params["b3"]
    dpw = jnp.full((D, 1), 1.0 / D, jnp.float32)       # mean(|x|) as an MXU matvec

    # ---- batch tiling: big tiles, but always >= 2 grid steps when B allows ----
    if B <= 8:
        tb = 8
    else:
        half = _round_up((B + 1) // 2, 8)
        tb = max(8, min(_round_up(tile_b, 8), half))
    Bp = _round_up(B, tb)
    if Bp != B:
        features = jnp.pad(features, ((0, Bp - B), (0, 0)))
    grid = (Bp // tb,)

    # ---- VMEM limit from the actual footprint (+headroom), not a fixed 48 MiB
    weight_bytes = sum(int(a.size) * a.dtype.itemsize
                       for a in (wcat, bcat, w2, b2, w3, b3, dpw))
    footprint = 2 * (tb * D * 4 + tb * 8 * 4) + 2 * weight_bytes  # double-buffered
    vmem_limit = int(footprint) + (16 << 20)

    def _resident(arr):
        # Constant index_map: block never changes -> stays VMEM-resident.
        return pl.BlockSpec(arr.shape, lambda i: (0, 0))

    packed = pl.pallas_call(
        _make_kernel(H),
        out_shape=jax.ShapeDtypeStruct((Bp, 8), jnp.float32),
        grid=grid,
        in_specs=[
            pl.BlockSpec((tb, D), lambda i: (i, 0)),      # x: tiled + pipelined
            _resident(wcat), _resident(bcat),
            _resident(w2), _resident(b2),
            _resident(w3), _resident(b3),
            _resident(dpw),
        ],
        out_specs=pl.BlockSpec((tb, 8), lambda i: (i, 0)),
        compiler_params=pltpu.CompilerParams(
            dimension_semantics=("parallel",),            # shard batch across TCs (v7x)
            vmem_limit_bytes=vmem_limit),
    )(features, wcat, bcat, w2, b2, w3, b3, dpw)

    packed = packed[:B]
    return {
        "trust_value": packed[:, 0:1],     # (B, 1)
        "ethics_scores": packed[:, 4:8],   # (B, 4)
        "chain_rank": packed[:, 1:2],      # (B, 1)
        "dp_score": packed[:, 2],          # (B,)  matches torch.mean(dim=1)
        "fraud_flag": packed[:, 3],        # (B,)  matches torch.max(dim=1)[0]
    }


def reference_forward(features, params):
    """Pure-JAX f32 reference matching the PyTorch module (eval mode)."""
    relu = lambda t: jnp.maximum(t, 0.0)
    h1 = relu(features @ params["w1"] + params["b1"])
    h2 = relu(h1 @ params["w2"] + params["b2"])
    chain = jax.nn.sigmoid(h2 @ params["w3"] + params["b3"])
    dp = jnp.mean(jnp.abs(features), axis=1)
    fraud = jnp.max(features, axis=1)
    v = features @ params["wv"] + params["bv"]
    fused = v @ params["wo"] + params["bo"]
    ethics = jax.nn.sigmoid(fused @ params["we"] + params["be"])
    trust = (0.6 * chain + 0.3 * dp[:, None]) / (0.1 * fraud[:, None] + 1.0)
    return {"trust_value": trust, "ethics_scores": ethics, "chain_rank": chain,
            "dp_score": dp, "fraud_flag": fraud}


if __name__ == "__main__":
    key = jax.random.PRNGKey(0)
    k_feat, k_params = jax.random.split(key)

    # Small shapes consistent with the module (input_dim == hidden_dim required
    # since features feed the attention layer directly).  B=12 also exercises
    # the ragged-batch padding path and gives a 2-step grid (both v7x TCs).
    B, D, H = 12, 32, 32
    features = jax.random.normal(k_feat, (B, D), jnp.float32)
    params = make_params(k_params, input_dim=D, hidden_dim=H)

    out = ahin_trust_forward(features, params)
    jax.block_until_ready(out)

    ref = reference_forward(features, params)
    assert out["trust_value"].shape == (B, 1)
    assert out["ethics_scores"].shape == (B, 4)
    assert out["chain_rank"].shape == (B, 1)
    assert out["dp_score"].shape == (B,)
    assert out["fraud_flag"].shape == (B,)
    # bf16 matmul operands + folded fusion weights -> allow a small tolerance.
    for name in ("trust_value", "ethics_scores", "chain_rank", "dp_score", "fraud_flag"):
        assert jnp.allclose(out[name], ref[name], atol=5e-2, rtol=5e-2), name

    print("KERNEL_OK")
</pallas_src>

<mosaic_0001>
module attributes {stable_mosaic.version = 11 : i64} {
  func.func @_trust_kernel(%arg0: i32, %arg1: memref<8x32xf32, #tpu.memory_space<vmem>>, %arg2: memref<32x36xbf16, #tpu.memory_space<vmem>>, %arg3: memref<1x36xf32, #tpu.memory_space<vmem>>, %arg4: memref<32x16xbf16, #tpu.memory_space<vmem>>, %arg5: memref<1x16xf32, #tpu.memory_space<vmem>>, %arg6: memref<16x1xf32, #tpu.memory_space<vmem>>, %arg7: memref<1x1xf32, #tpu.memory_space<vmem>>, %arg8: memref<32x1xf32, #tpu.memory_space<vmem>>, %arg9: memref<8x8xf32, #tpu.memory_space<vmem>>) attributes {dimension_semantics = [#tpu.dimension_semantics<parallel>], iteration_bounds = array<i64: 2>, scalar_prefetch = 0 : i64, scratch_operands = 0 : i64, tpu.core_type = #tpu.core_type<tc>, window_params = [{transform_indices = @transform_0, window_bounds = array<i64: 8, 32>}, {pipeline_mode = #tpu.pipeline_mode<synchronous>, transform_indices = @transform_1, window_bounds = array<i64: 32, 36>}, {pipeline_mode = #tpu.pipeline_mode<synchronous>, transform_indices = @transform_2, window_bounds = array<i64: 1, 36>}, {pipeline_mode = #tpu.pipeline_mode<synchronous>, transform_indices = @transform_3, window_bounds = array<i64: 32, 16>}, {pipeline_mode = #tpu.pipeline_mode<synchronous>, transform_indices = @transform_4, window_bounds = array<i64: 1, 16>}, {pipeline_mode = #tpu.pipeline_mode<synchronous>, transform_indices = @transform_5, window_bounds = array<i64: 16, 1>}, {pipeline_mode = #tpu.pipeline_mode<synchronous>, transform_indices = @transform_6, window_bounds = array<i64: 1, 1>}, {pipeline_mode = #tpu.pipeline_mode<synchronous>, transform_indices = @transform_7, window_bounds = array<i64: 32, 1>}, {transform_indices = @transform_8, window_bounds = array<i64: 8, 8>}]} {
    %c0 = arith.constant 0 : index
    %c0_0 = arith.constant 0 : index
    %0 = vector.load %arg1[%c0, %c0_0] : memref<8x32xf32, #tpu.memory_space<vmem>>, vector<8x32xf32>
    %1 = arith.truncf %0 : vector<8x32xf32> to vector<8x32xbf16>
    %c0_1 = arith.constant 0 : index
    %c0_2 = arith.constant 0 : index
    %2 = vector.load %arg2[%c0_1, %c0_2] : memref<32x36xbf16, #tpu.memory_space<vmem>>, vector<32x36xbf16>
    %cst = arith.constant dense<0.000000e+00> : vector<8x36xf32>
    %3 = tpu.matmul %1, %2, %cst {dimension_numbers = #tpu.dot_dimension_numbers<[1], [0], [0], [1], [0, 0, 1, 1], [], []>} : vector<8x32xbf16>, vector<32x36xbf16>, vector<8x36xf32> -> vector<8x36xf32>
    %c0_3 = arith.constant 0 : index
    %c0_4 = arith.constant 0 : index
    %4 = vector.load %arg3[%c0_3, %c0_4] : memref<1x36xf32, #tpu.memory_space<vmem>>, vector<1x36xf32>
    %5 = vector.broadcast %4 : vector<1x36xf32> to vector<8x36xf32>
    %6 = arith.addf %3, %5 : vector<8x36xf32>
    %7 = vector.extract_strided_slice %6 {offsets = [0, 0], sizes = [8, 32], strides = [1, 1]} : vector<8x36xf32> to vector<8x32xf32>
    %cst_5 = arith.constant 0.000000e+00 : f32
    %8 = vector.broadcast %cst_5 : f32 to vector<8x32xf32>
    %9 = arith.maximumf %7, %8 : vector<8x32xf32>
    %10 = vector.extract_strided_slice %6 {offsets = [0, 32], sizes = [8, 4], strides = [1, 1]} : vector<8x36xf32> to vector<8x4xf32>
    %11 = math.absf %10 : vector<8x4xf32>
    %cst_6 = arith.constant 0.000000e+00 : f32
    %12 = vector.broadcast %cst_6 : f32 to vector<8x4xf32>
    %13 = arith.subf %12, %11 : vector<8x4xf32>
    %14 = math.exp %13 : vector<8x4xf32>
    %cst_7 = arith.constant 1.000000e+00 : f32
    %15 = vector.broadcast %cst_7 : f32 to vector<8x4xf32>
    %16 = arith.addf %15, %14 : vector<8x4xf32>
    %17 = arith.divf %14, %16 : vector<8x4xf32>
    %cst_8 = arith.constant 0.000000e+00 : f32
    %18 = vector.broadcast %cst_8 : f32 to vector<8x4xf32>
    %19 = arith.cmpf oge, %10, %18 : vector<8x4xf32>
    %cst_9 = arith.constant 1.000000e+00 : f32
    %20 = vector.broadcast %cst_9 : f32 to vector<8x4xf32>
    %21 = arith.subf %20, %17 : vector<8x4xf32>
    %22 = arith.select %19, %21, %17 : vector<8x4xi1>, vector<8x4xf32>
    %23 = arith.truncf %9 : vector<8x32xf32> to vector<8x32xbf16>
    %c0_10 = arith.constant 0 : index
    %c0_11 = arith.constant 0 : index
    %24 = vector.load %arg4[%c0_10, %c0_11] : memref<32x16xbf16, #tpu.memory_space<vmem>>, vector<32x16xbf16>
    %cst_12 = arith.constant dense<0.000000e+00> : vector<8x16xf32>
    %25 = tpu.matmul %23, %24, %cst_12 {dimension_numbers = #tpu.dot_dimension_numbers<[1], [0], [0], [1], [0, 0, 1, 1], [], []>} : vector<8x32xbf16>, vector<32x16xbf16>, vector<8x16xf32> -> vector<8x16xf32>
    %c0_13 = arith.constant 0 : index
    %c0_14 = arith.constant 0 : index
    %26 = vector.load %arg5[%c0_13, %c0_14] : memref<1x16xf32, #tpu.memory_space<vmem>>, vector<1x16xf32>
    %27 = vector.broadcast %26 : vector<1x16xf32> to vector<8x16xf32>
    %28 = arith.addf %25, %27 : vector<8x16xf32>
    %cst_15 = arith.constant 0.000000e+00 : f32
    %29 = vector.broadcast %cst_15 : f32 to vector<8x16xf32>
    %30 = arith.maximumf %28, %29 : vector<8x16xf32>
    %c0_16 = arith.constant 0 : index
    %c0_17 = arith.constant 0 : index
    %31 = vector.load %arg6[%c0_16, %c0_17] : memref<16x1xf32, #tpu.memory_space<vmem>>, vector<16x1xf32>
    %cst_18 = arith.constant dense<0.000000e+00> : vector<8x1xf32>
    %32 = tpu.matmul %30, %31, %cst_18 {dimension_numbers = #tpu.dot_dimension_numbers<[1], [0], [0], [1], [0, 0, 1, 1], [], []>} : vector<8x16xf32>, vector<16x1xf32>, vector<8x1xf32> -> vector<8x1xf32>
    %c0_19 = arith.constant 0 : index
    %c0_20 = arith.constant 0 : index
    %33 = vector.load %arg7[%c0_19, %c0_20] : memref<1x1xf32, #tpu.memory_space<vmem>>, vector<1x1xf32>
    %34 = vector.broadcast %33 : vector<1x1xf32> to vector<8x1xf32>
    %35 = arith.addf %32, %34 : vector<8x1xf32>
    %36 = math.absf %35 : vector<8x1xf32>
    %cst_21 = arith.constant 0.000000e+00 : f32
    %37 = vector.broadcast %cst_21 : f32 to vector<8x1xf32>
    %38 = arith.subf %37, %36 : vector<8x1xf32>
    %39 = math.exp %38 : vector<8x1xf32>
    %cst_22 = arith.constant 1.000000e+00 : f32
    %40 = vector.broadcast %cst_22 : f32 to vector<8x1xf32>
    %41 = arith.addf %40, %39 : vector<8x1xf32>
    %42 = arith.divf %39, %41 : vector<8x1xf32>
    %cst_23 = arith.constant 0.000000e+00 : f32
    %43 = vector.broadcast %cst_23 : f32 to vector<8x1xf32>
    %44 = arith.cmpf oge, %35, %43 : vector<8x1xf32>
    %cst_24 = arith.constant 1.000000e+00 : f32
    %45 = vector.broadcast %cst_24 : f32 to vector<8x1xf32>
    %46 = arith.subf %45, %42 : vector<8x1xf32>
    %47 = arith.select %44, %46, %42 : vector<8x1xi1>, vector<8x1xf32>
    %48 = math.absf %0 : vector<8x32xf32>
    %c0_25 = arith.constant 0 : index
    %c0_26 = arith.constant 0 : index
    %49 = vector.load %arg8[%c0_25, %c0_26] : memref<32x1xf32, #tpu.memory_space<vmem>>, vector<32x1xf32>
    %cst_27 = arith.constant dense<0.000000e+00> : vector<8x1xf32>
    %50 = tpu.matmul %48, %49, %cst_27 {dimension_numbers = #tpu.dot_dimension_numbers<[1], [0], [0], [1], [0, 0, 1, 1], [], []>} : vector<8x32xf32>, vector<32x1xf32>, vector<8x1xf32> -> vector<8x1xf32>
    %cst_28 = arith.constant dense<0xFF800000> : vector<8xf32>
    %51 = vector.multi_reduction <maximumf>, %0, %cst_28 [1] : vector<8x32xf32> to vector<8xf32>
    %52 = vector.shape_cast %51 : vector<8xf32> to vector<8x1xf32>
    %cst_29 = arith.constant 6.000000e-01 : f32
    %53 = vector.broadcast %cst_29 : f32 to vector<8x1xf32>
    %54 = arith.mulf %53, %47 : vector<8x1xf32>
    %cst_30 = arith.constant 3.000000e-01 : f32
    %55 = vector.broadcast %cst_30 : f32 to vector<8x1xf32>
    %56 = arith.mulf %55, %50 : vector<8x1xf32>
    %57 = arith.addf %54, %56 : vector<8x1xf32>
    %cst_31 = arith.constant 1.000000e-01 : f32
    %58 = vector.broadcast %cst_31 : f32 to vector<8x1xf32>
    %59 = arith.mulf %58, %52 : vector<8x1xf32>
    %cst_32 = arith.constant 1.000000e+00 : f32
    %60 = vector.broadcast %cst_32 : f32 to vector<8x1xf32>
    %61 = arith.addf %59, %60 : vector<8x1xf32>
    %62 = arith.divf %57, %61 : vector<8x1xf32>
    %63 = tpu.concatenate %62, %47, %50, %52, %22 in 1 : vector<8x1xf32>, vector<8x1xf32>, vector<8x1xf32>, vector<8x1xf32>, vector<8x4xf32> -> vector<8x8xf32>
    %c0_33 = arith.constant 0 : index
    %c0_34 = arith.constant 0 : index
    %64 = vector.load %arg9[%c0_33, %c0_34] : memref<8x8xf32, #tpu.memory_space<vmem>>, vector<8x8xf32>
    tpu.vector_store %arg9[%c0_33, %c0_34], %63 {strides = array<i32>} : memref<8x8xf32, #tpu.memory_space<vmem>>, vector<8x8xf32>,
    return
  }
  func.func @transform_0(%arg0: i32) -> (i32, i32) {
    %c0_i32 = arith.constant 0 : i32
    %c0_i32_0 = arith.constant 0 : i32
    return %arg0, %c0_i32 : i32, i32
  }
  func.func @transform_1(%arg0: i32) -> (i32, i32) {
    %c0_i32 = arith.constant 0 : i32
    %c0_i32_0 = arith.constant 0 : i32
    %c0_i32_1 = arith.constant 0 : i32
    return %c0_i32, %c0_i32_0 : i32, i32
  }
  func.func @transform_2(%arg0: i32) -> (i32, i32) {
    %c0_i32 = arith.constant 0 : i32
    %c0_i32_0 = arith.constant 0 : i32
    %c0_i32_1 = arith.constant 0 : i32
    return %c0_i32, %c0_i32_0 : i32, i32
  }
  func.func @transform_3(%arg0: i32) -> (i32, i32) {
    %c0_i32 = arith.constant 0 : i32
    %c0_i32_0 = arith.constant 0 : i32
    %c0_i32_1 = arith.constant 0 : i32
    return %c0_i32, %c0_i32_0 : i32, i32
  }
  func.func @transform_4(%arg0: i32) -> (i32, i32) {
    %c0_i32 = arith.constant 0 : i32
    %c0_i32_0 = arith.constant 0 : i32
    %c0_i32_1 = arith.constant 0 : i32
    return %c0_i32, %c0_i32_0 : i32, i32
  }
  func.func @transform_5(%arg0: i32) -> (i32, i32) {
    %c0_i32 = arith.constant 0 : i32
    %c0_i32_0 = arith.constant 0 : i32
    %c0_i32_1 = arith.constant 0 : i32
    return %c0_i32, %c0_i32_0 : i32, i32
  }
  func.func @transform_6(%arg0: i32) -> (i32, i32) {
    %c0_i32 = arith.constant 0 : i32
    %c0_i32_0 = arith.constant 0 : i32
    %c0_i32_1 = arith.constant 0 : i32
    return %c0_i32, %c0_i32_0 : i32, i32
  }
  func.func @transform_7(%arg0: i32) -> (i32, i32) {
    %c0_i32 = arith.constant 0 : i32
    %c0_i32_0 = arith.constant 0 : i32
    %c0_i32_1 = arith.constant 0 : i32
    return %c0_i32, %c0_i32_0 : i32, i32
  }
  func.func @transform_8(%arg0: i32) -> (i32, i32) {
    %c0_i32 = arith.constant 0 : i32
    %c0_i32_0 = arith.constant 0 : i32
    return %arg0, %c0_i32 : i32, i32
  }
}

</mosaic_0001>

<bundles_post_ra>
// kernel: tpu_custom_call.1
= control target key start
LH: loop header
LB: loop body
LE: loop exit
PB: predicated region body
PF: predicated region fallthrough
CT: control target
= control target key end

     0   :  { %s875_s29 = smov 0   ;;  %s943_s0 = inlined_call_operand.vmem [shape: f32[16,32], index: 0, kind: input, shape index: {}]   ;;  %s944_s1 = inlined_call_operand.vmem [shape: bf16[32,36], index: 1, kind: input, shape index: {}]   ;;  %s945_s2 = inlined_call_operand.vmem [shape: f32[1,36], index: 2, kind: input, shape index: {}]   ;;  %s946_s3 = inlined_call_operand.vmem [shape: bf16[32,16], index: 3, kind: input, shape index: {}]   ;;  %s947_s4 = inlined_call_operand.vmem [shape: f32[1,16], index: 4, kind: input, shape index: {}]   ;;  %s948_s5 = inlined_call_operand.vmem [shape: f32[16,1], index: 5, kind: input, shape index: {}]   ;;  %s949_s6 = inlined_call_operand.<no memory space> [shape: f32[1,1], index: 6, kind: input, shape index: {}]   ;;  %s950_s7 = inlined_call_operand.vmem [shape: f32[32,1], index: 7, kind: input, shape index: {}]   ;;  %s951_s8 = inlined_call_operand.vmem [shape: f32[16,8], index: 8, kind: output, shape index: {}]  }
   0x1   :  { %v13_v0 = vstv %s949_s6 }
   0x2   :  { %14 = vst [vmem:[#allocation2] sm:$0x1] %v13_v0 }
   0x3 LB: > { %s708_s30 = sadd.s32 4294967295, %s819_s29   ;;  %p712_p0 = scmp.ge.s32.totalorder %s819_s29, 1  ;;  %s819_s29 = sphi %s875_s29, %s20_s29  }
   0x4   : > { %p263_p1 = scmp.lt.s32.totalorder %s819_s29, 3 }
   0x6   : > { %p264_p2 = pnand %p712_p0, %p263_p1 }
   0x7   : > { %v799_v1 = vld [vmem:[%s944_s1] sm:$0xff] (!%p264_p2)   ;;  %v821_v2 = vmov (!%p264_p2), 0.0   ;;  %v800_v3 = vld [vmem:[%s944_s1 + $0x8] sm:$0xff] (!%p264_p2)   ;;  %vm822_vm0 = vmmov (!%p264_p2), 0   ;;  %p295_p3 = scmp.lt.s32.totalorder (!%p264_p2), %s708_s30, 1  ;;  %vm329_vm1 = vcmask (!%p264_p2), 261120  }
   0x8   : > { %267 = sbr.rel (%p264_p2) target bundleno = 824 (0x338), region = 52  ;;  %742 = vmatprep.subr.bf16.mxu0 (!%p264_p2), %v821_v2  ;;  %750 = vmatprep.subr.bf16.mxu1 (!%p264_p2), %v821_v2  ;;  %v801_v6 = vld [vmem:[%s946_s3] sm:$0xff] (!%p264_p2)   ;;  %v802_v7 = vld [vmem:[%s946_s3 + $0x8] sm:$0xff] (!%p264_p2)   ;;  %v823_v8 = vmov (!%p264_p2), 0.0|0.0   ;;  %v548_v23 = vld [vmem:[%s950_s7 + $0x10] sm:$0xff] (!%p264_p2)  ;;  %vm461_vm2 = vcmask (!%p264_p2), 130048  }
   0x9   : > { %743 = vmatpush3.bf16.msra.mxu0 (!%p264_p2), %v799_v1  ;;  %746 = vmatprep.mubr.msk.bf16.mxu0 (!%p264_p2), %vm822_vm0, %v821_v2  ;;  %v452_v9 = vld [vmem:[%s948_s5] sm:$0xff] (!%p264_p2)  ;;  %v453_v10 = vld [vmem:[%s948_s5 + $0x8] sm:$0xff] (!%p264_p2)  ;;  %v549_v24 = vld [vmem:[%s950_s7 + $0x18] sm:$0xff] (!%p264_p2)  ;;  %s824_s16 = smov (!%p264_p2), 2   ;;  %s825_s17 = smov (!%p264_p2), 100   ;;  %vm645_vm5 = vcmask (!%p264_p2), 7168  }
   0xa   : > { %744 = vmatprep.subr.bf16.mxu0 (!%p264_p2), %v821_v2  ;;  %754 = vmatprep.mubr.msk.bf16.mxu1 (!%p264_p2), %vm822_vm0, %v821_v2  ;;  %v777_v11 = vpack.c.bf16 (!%p264_p2), %v453_v10, %v452_v9  ;;  %v715_v12 = vld [vmem:[%s945_s2] ss:$0 sm:$0xff] (!%p264_p2)  ;;  %v547_v17 = vld [vmem:[%s950_s7 + $0x8] sm:$0xff] (!%p264_p2)  ;;  %v783_v25 = vpack.c.bf16 (!%p264_p2), %v549_v24, %v548_v23  ;;  %s826_s18 = smov (!%p264_p2), 1   ;;  %vm647_vm6 = vcmask (!%p264_p2), 15360   ;;  %vm649_vm7 = vcmask (!%p264_p2), 23552  }
   0xb   : > { %751 = vmatpush3.bf16.msra.mxu1 (!%p264_p2), %v801_v6  ;;  %v546_v16 = vld [vmem:[%s950_s7] sm:$0xff] (!%p264_p2)  ;;  %vm651_vm8 = vcmask (!%p264_p2), 31744   ;;  %vm653_vm9 = vcmask (!%p264_p2), 64512  }
   0xc   : > { %752 = vmatprep.subr.bf16.mxu1 (!%p264_p2), %v821_v2  ;;  %v780_v21 = vpack.c.bf16 (!%p264_p2), %v547_v17, %v546_v16  ;;  %v719_v33 = vld [vmem:[%s947_s4] ss:$0 sm:$0xff] (!%p264_p2) }
   0xd   : > { %745 = vmatpush3.bf16.msra.mxu0 (!%p264_p2), %v800_v3  ;;  %v723_v46 = vld [vmem:[#allocation2] ss:$0 sm:$0xff] (!%p264_p2) }
   0xe   : > { %776 = vmatprep.subr.bf16.mxu0 (!%p264_p2), %v823_v8 }
   0xf   : > { %s953_s30 = smov (!%p295_p3, %s708_s30), 1  ;;  %753 = vmatpush3.bf16.msra.mxu1 %v802_v7 }
  0x10   : > { %s713_s12 = sshll.u32 %s953_s30, 3  ;;  %779 = vmatprep.subr.bf16.mxu1 %v823_v8 }
  0x11   : > { %s298_s15 = scalar_lea.vmem %s943_s0, %s713_s12  ;;  %s302_s21 = scalar_lea.vmem %s951_s8, %s713_s12 }
  0x12   : > { %v304_v4 = vld [vmem:[%s298_s15] sm:$0xff] }
  0x13   : > { %v305_v5 = vpack.c.bf16 %v304_v4, %v304_v4  ;;  %v545_v26 = vand.u32 2147483647, %v304_v4  ;;  %v623_v27 = vsel %vm329_vm1, %v304_v4, -inf }
  0x14   : > { %624 = vmax.xlane.f32.xlu0 %v623_v27 }
  0x15   : > { %747 = vmatmul.mubr.msk.bf16.vlgmr.msra.gmra.mrb[0].mxu0 %vm329_vm1, %v305_v5 }
  0x16   : > { %762 = vmatprep.mubr.msk.f32.mxu0 %vm822_vm0, %v821_v2  ;;  %778 = vmatpush3.bf16.msra.mxu0 %v777_v11 }
  0xa1   : > { %v625_v62 = vpop.xlane.xlu0 %624 }
  0xa2   : > { %v629_v63 = vmul.f32 0.1, %v625_v62 }
  0xa4   : > { %v630_v0 = vadd.f32 1.0, %v629_v63 }
  0xe8   : > { %v367_v13 = vpop.f32.mrb[0].mxu0 }
  0xe9   : > { %v368_v14 = vadd.f32 %v715_v12, %v367_v13  ;;  %v748_v15 = vpop.f32.mrb[1].mxu0 }
  0xea   : > { %v370_v18 = vpop.f32.mrb[2].mxu0 }
  0xeb   : > { %v373_v19 = vmax.f32 %v368_v14, 0.0  ;;  %v749_v20 = vpop.f32.mrb[3].mxu0  ;;  %v374_v28 = vand.u32 2147483647, %v368_v14  ;;  %vm381_vm3 = vcmp.ge.f32.partialorder %v368_v14, 0.0 }
  0xed   : > { %v384_v22 = vpack.c.bf16 %v373_v19, %v373_v19  ;;  %v375_v29 = vsub.f32 0.0, %v374_v28 }
  0xef   : > { %755 = vmatmul.mubr.msk.bf16.vlgmr.msra.gmra.mrb[0].mxu1 %vm329_vm1, %v384_v22  ;;  %v376_v30 = vmul.f32 1.442695, %v375_v29 }
  0xf0   : > { %781 = vmatpush3.bf16.msra.mxu1 %v780_v21  ;;  %773 = vmatprep.mubr.msk.f32.mxu1 %vm822_vm0, %v821_v2 }
  0xf1   : > { %782 = vmatprep.subr.bf16.mxu1 %v823_v8  ;;  %803 = vpow2.f32 %v376_v30 }
  0xf4   : > { %784 = vmatpush3.bf16.msra.mxu1 %v783_v25 }
  0xf7   : > { %774 = vmatmul.mubr.msk.f32.vlgmr.msra.gmra.mrb[4].mxu1 %vm329_vm1, %v545_v26 }
  0xfb   : > { %v804_v31 = vpop.eup %803 }
  0xfc   : > { %v378_v32 = vadd.f32 1.0, %v804_v31 }
  0xfe   : > { %805 = vrcp.f32 %v378_v32 }
 0x108   : > { %v806_v35 = vpop.eup %805 }
 0x109   : > { %v380_v41 = vmul.f32 %v806_v35, %v804_v31 }
 0x10b   : > { %v382_v43 = vsub.f32 1.0, %v380_v41 }
 0x10d   : > { %v383_v45 = vsel %vm381_vm3, %v382_v43, %v380_v41 }
 0x1c2   : > { %v445_v34 = vpop.f32.mrb[0].mxu1 }
 0x1c3   : > { %v446_v36 = vadd.f32 %v719_v33, %v445_v34  ;;  %v756_v37 = vpop.f32.mrb[1].mxu1 }
 0x1c4   : > { %v448_v38 = vpop.f32.mrb[2].mxu1 }
 0x1c5   : > { %v451_v39 = vmax.f32 %v446_v36, 0.0  ;;  %v757_v40 = vpop.f32.mrb[3].mxu1 }
 0x1c7   : > { %763 = vmatmul.mubr.msk.f32.vlgmr.msra.gmra.mrb[4].mxu0 %vm461_vm2, %v451_v39 }
 0x1ca   : > { %v619_v42 = vpop.f32.mrb[4].mxu1 }
 0x1cb   : > { %638 = vrot.lane.b32.xlu1 %v619_v42, %s824_s16  ;;  %v775_v44 = vpop.f32.mrb[5].mxu1  ;;  %v627_v58 = vmul.f32 0.3, %v619_v42 }
 0x1cf   : > { %642 = vrot.lane.b32.xlu1 %v383_v45, %s825_s17 }
 0x23d   : > { %v639_v2 = vpop.permute.xlu1 %638 }
 0x241   : > { %v643_v7 = vpop.permute.xlu1 %642 }
 0x29a   : > { %v531_v47 = vpop.f32.mrb[4].mxu0 }
 0x29b   : > { %v532_v48 = vadd.f32 %v723_v46, %v531_v47  ;;  %v764_v49 = vpop.f32.mrb[5].mxu0 }
 0x29d   : > { %v535_v50 = vand.u32 2147483647, %v532_v48  ;;  %vm542_vm4 = vcmp.ge.f32.partialorder %v532_v48, 0.0 }
 0x29f   : > { %v536_v51 = vsub.f32 0.0, %v535_v50 }
 0x2a1   : > { %v537_v52 = vmul.f32 1.442695, %v536_v51 }
 0x2a3   : > { %807 = vpow2.f32 %v537_v52 }
 0x2ad   : > { %v808_v53 = vpop.eup %807 }
 0x2ae   : > { %v539_v54 = vadd.f32 1.0, %v808_v53 }
 0x2b0   : > { %809 = vrcp.f32 %v539_v54 }
 0x2b1   : > { %811 = vrcp.f32 %v630_v0 }
 0x2ba   : > { %v810_v55 = vpop.eup %809 }
 0x2bb   : > { %v541_v56 = vmul.f32 %v810_v55, %v808_v53  ;;  %v812_v1 = vpop.eup %811 }
 0x2bd   : > { %v543_v57 = vsub.f32 1.0, %v541_v56 }
 0x2bf   : > { %v544_v59 = vsel %vm542_vm4, %v543_v57, %v541_v56 }
 0x2c0   : > { %634 = vrot.lane.b32.xlu0 %v544_v59, %s826_s18  ;;  %v626_v60 = vmul.f32 0.6, %v544_v59 }
 0x2c2   : > { %v628_v61 = vadd.f32 %v627_v58, %v626_v60 }
 0x2c4   : > { %v632_v3 = vmul.f32 %v812_v1, %v628_v61 }
 0x332   : > { %v635_v4 = vpop.permute.xlu0 %634 }
 0x333   : > { %v646_v5 = vsel %vm645_vm5, %v632_v3, %v635_v4 }
 0x334   : > { %v648_v6 = vsel %vm647_vm6, %v646_v5, %v639_v2 }
 0x335   : > { %v650_v8 = vsel %vm649_vm7, %v648_v6, %v625_v62 }
 0x336   : > { %v652_v9 = vsel %vm651_vm8, %v650_v8, %v643_v7 }
 0x337   : > { %654 = vst.msk [vmem:[%s302_s21] sm:$0xff] %vm653_vm9, %v652_v9 }
 0x338 PF: > { %s20_s29 = sadd.s32 1, %s819_s29  }
 0x339   : > { %p17_p4 = scmp.ge.s32.totalorder %s20_s29, 4  }
 0x33b   :  { %19 = sbr.rel (!%p17_p4) target bundleno = 3 (0x3), region = 82 }

</bundles_post_ra>
